<compile_context>
chip_gen: v6e
topology: v6e:2x2x1
jax: 0.10.0
libtpu: 0.0.40
codegen_flags: <defaults>
</compile_context>

<pallas_src>
import functools

import jax
import jax.numpy as jnp
from jax.experimental import pallas as pl
from jax.experimental.pallas import tpu as pltpu

_LANES = 128
_SUBLANES = 8


def _round_up(x, m):
    return ((x + m - 1) // m) * m


def _critic_kernel(s_ref, a_ref, w1s_ref, w1a_ref, b1_ref, w2_ref, b2_ref,
                   w3_ref, b3_ref, o_ref, *, matmul_dtype):
    """Per batch-tile fused MLP: relu(s@W1s + a@W1a + b1) -> relu(.@W2 + b2) -> .@W3 + b3."""

    def mm(x, w_ref):
        # Matmul inputs may be downcast (bf16 on v6e/v7x); accumulate in f32 on the MXU.
        return jnp.dot(x.astype(matmul_dtype), w_ref[...].astype(matmul_dtype),
                       preferred_element_type=jnp.float32)

    h1 = mm(s_ref[...], w1s_ref) + mm(a_ref[...], w1a_ref) + b1_ref[...]
    h1 = jnp.maximum(h1, 0.0)                                   # ReLU in f32 (VPU)
    h2 = jnp.maximum(mm(h1, w2_ref) + b2_ref[...], 0.0)         # (TB, 384)
    q = mm(h2, w3_ref) + b3_ref[...]                            # (TB, 128) lane-dense
    o_ref[...] = q.astype(o_ref.dtype)


def critic_forward(inputs, actions, params, *, block_b=512, use_bf16_matmul=False):
    """inputs: (B, num_inputs), actions: (B, num_actions) -> (B, 1) float32."""
    w1s, w1a, b1, w2, b2, w3, b3 = params
    B = inputs.shape[0]
    k_s = w1s.shape[0]
    k_a = w1a.shape[0]
    h1_dim = w1s.shape[1]
    h2_dim = w2.shape[1]
    n_out = w3.shape[1]          # 128: lane-padded final layer, column 0 is real

    s = inputs.astype(jnp.float32)
    a = actions.astype(jnp.float32)

    # Batch tile: multiple of the f32 sublane count (8); modest default (512) so two
    # buffers of (tiles + intermediates) fit v7x's smaller VMEM and v5e's 16 MiB default.
    tb = _round_up(min(block_b, _round_up(B, _SUBLANES)), _SUBLANES)
    b_pad = _round_up(B, tb)
    if b_pad != B:   # pad batch so the grid tiles evenly; padded rows are discarded
        s = jnp.pad(s, ((0, b_pad - B), (0, 0)))
        a = jnp.pad(a, ((0, b_pad - B), (0, 0)))

    grid = (pl.cdiv(b_pad, tb),)

    # Cost / VMEM hints.
    param_bytes = 4 * sum(int(p.size) for p in params)
    tile_bytes = 4 * tb * (k_s + k_a + n_out + h1_dim + h2_dim)
    vmem_limit = int(min(max(2 * (2 * tile_bytes + param_bytes), 8 * 1024 * 1024),
                         32 * 1024 * 1024))
    flops = 2 * b_pad * (k_s * h1_dim + k_a * h1_dim + h1_dim * h2_dim + h2_dim * n_out)
    bytes_accessed = 4 * b_pad * (k_s + k_a + n_out) + param_bytes

    # Weights/biases: full-array blocks with constant index maps -> VMEM-resident
    # across all batch-tile iterations (no re-DMA).
    weight_specs = [pl.BlockSpec(w.shape, lambda i: (0, 0))
                    for w in (w1s, w1a, b1, w2, b2, w3, b3)]

    kernel = functools.partial(
        _critic_kernel,
        matmul_dtype=jnp.bfloat16 if use_bf16_matmul else jnp.float32)

    out = pl.pallas_call(
        kernel,
        out_shape=jax.ShapeDtypeStruct((b_pad, n_out), jnp.float32),
        grid_spec=pltpu.PrefetchScalarGridSpec(
            num_scalar_prefetch=0,
            grid=grid,
            in_specs=[
                pl.BlockSpec((tb, k_s), lambda i: (i, 0)),   # state batch tile
                pl.BlockSpec((tb, k_a), lambda i: (i, 0)),   # action batch tile
            ] + weight_specs,
            out_specs=pl.BlockSpec((tb, n_out), lambda i: (i, 0)),
        ),
        compiler_params=pltpu.CompilerParams(
            dimension_semantics=("parallel",),
            vmem_limit_bytes=vmem_limit,
        ),
        cost_estimate=pl.CostEstimate(
            flops=flops, transcendentals=0, bytes_accessed=bytes_accessed),
    )(s, a, w1s, w1a, b1, w2, b2, w3, b3)

    # Column 0 holds the real Q value; the remaining 127 lanes are write padding.
    return out[:B, :1]


def init_critic_params(key, num_inputs, num_actions, hidden_size, mid_size=300):
    """PyTorch-style uniform(-1/sqrt(fan_in), 1/sqrt(fan_in)) init, padded to TPU tiles.

    Weights are stored as (in_features, out_features) so the kernel computes x @ W.
    Padded rows/cols are zero, so the padded network is exactly equivalent to the
    unpadded PyTorch module.
    """
    h1_pad = _round_up(max(hidden_size, _LANES), _LANES)   # 32  -> 128
    h2_pad = _round_up(max(mid_size, _LANES), _LANES)      # 300 -> 384
    n_out_pad = _LANES                                     # 1   -> 128 (lane-dense store)

    k1, k2, k3, k4, k5, k6 = jax.random.split(key, 6)

    def unif(k, shape, fan_in):
        bound = 1.0 / (float(fan_in) ** 0.5)
        return jax.random.uniform(k, shape, jnp.float32, -bound, bound)

    d_in = num_inputs + num_actions
    w1 = unif(k1, (d_in, hidden_size), d_in)        # logical Linear(d_in, hidden)
    b1 = unif(k2, (1, hidden_size), d_in)
    w2 = unif(k3, (hidden_size, mid_size), hidden_size)
    b2 = unif(k4, (1, mid_size), hidden_size)
    w3 = unif(k5, (mid_size, 1), mid_size)
    b3 = unif(k6, (1, 1), mid_size)

    # Split W1 into state/action halves (removes the runtime concat) and zero-pad.
    w1s = jnp.zeros((num_inputs, h1_pad), jnp.float32).at[:, :hidden_size].set(w1[:num_inputs])
    w1a = jnp.zeros((num_actions, h1_pad), jnp.float32).at[:, :hidden_size].set(w1[num_inputs:])
    b1p = jnp.zeros((1, h1_pad), jnp.float32).at[:, :hidden_size].set(b1)
    w2p = jnp.zeros((h1_pad, h2_pad), jnp.float32).at[:hidden_size, :mid_size].set(w2)
    b2p = jnp.zeros((1, h2_pad), jnp.float32).at[:, :mid_size].set(b2)
    w3p = jnp.zeros((h2_pad, n_out_pad), jnp.float32).at[:mid_size, :1].set(w3)
    b3p = jnp.zeros((1, n_out_pad), jnp.float32).at[:, :1].set(b3)
    return (w1s, w1a, b1p, w2p, b2p, w3p, b3p)


def critic_reference(inputs, actions, params):
    """Pure-JAX reference (same math as the PyTorch module) on the padded params."""
    w1s, w1a, b1, w2, b2, w3, b3 = params
    h1 = jnp.maximum(inputs @ w1s + actions @ w1a + b1, 0.0)
    h2 = jnp.maximum(h1 @ w2 + b2, 0.0)
    return (h2 @ w3 + b3)[:, :1]


if __name__ == "__main__":
    # Small shapes consistent with the module: state dim 16, action dim 4, hidden 32.
    batch, num_inputs, num_actions, hidden_size = 2, 16, 4, 32

    key = jax.random.PRNGKey(0)
    k_in, k_act, k_par = jax.random.split(key, 3)

    inputs = jax.random.normal(k_in, (batch, num_inputs), jnp.float32)
    actions = jax.random.normal(k_act, (batch, num_actions), jnp.float32)
    params = init_critic_params(k_par, num_inputs, num_actions, hidden_size)

    # f32 matmuls by default (use_bf16_matmul=True is the v6e/v7x fast path with
    # ~1e-2 tolerance vs the f32 reference).
    q = critic_forward(inputs, actions, params)
    q = jax.block_until_ready(q)

    q_ref = critic_reference(inputs, actions, params)
    assert q.shape == (batch, 1), q.shape
    assert jnp.allclose(q, q_ref, atol=1e-5, rtol=1e-5), (q, q_ref)

    print("KERNEL_OK")
</pallas_src>

<mosaic_0001>
module attributes {stable_mosaic.version = 11 : i64} {
  func.func @_critic_kernel(%arg0: i32, %arg1: memref<8x16xf32, #tpu.memory_space<vmem>>, %arg2: memref<8x4xf32, #tpu.memory_space<vmem>>, %arg3: memref<16x128xf32, #tpu.memory_space<vmem>>, %arg4: memref<4x128xf32, #tpu.memory_space<vmem>>, %arg5: memref<1x128xf32, #tpu.memory_space<vmem>>, %arg6: memref<128x384xf32, #tpu.memory_space<vmem>>, %arg7: memref<1x384xf32, #tpu.memory_space<vmem>>, %arg8: memref<384x128xf32, #tpu.memory_space<vmem>>, %arg9: memref<1x128xf32, #tpu.memory_space<vmem>>, %arg10: memref<8x128xf32, #tpu.memory_space<vmem>>) attributes {dimension_semantics = [#tpu.dimension_semantics<parallel>], iteration_bounds = array<i64: 1>, scalar_prefetch = 0 : i64, scratch_operands = 0 : i64, tpu.core_type = #tpu.core_type<tc>, window_params = [{transform_indices = @transform_0, window_bounds = array<i64: 8, 16>}, {transform_indices = @transform_1, window_bounds = array<i64: 8, 4>}, {pipeline_mode = #tpu.pipeline_mode<synchronous>, transform_indices = @transform_2, window_bounds = array<i64: 16, 128>}, {pipeline_mode = #tpu.pipeline_mode<synchronous>, transform_indices = @transform_3, window_bounds = array<i64: 4, 128>}, {pipeline_mode = #tpu.pipeline_mode<synchronous>, transform_indices = @transform_4, window_bounds = array<i64: 1, 128>}, {pipeline_mode = #tpu.pipeline_mode<synchronous>, transform_indices = @transform_5, window_bounds = array<i64: 128, 384>}, {pipeline_mode = #tpu.pipeline_mode<synchronous>, transform_indices = @transform_6, window_bounds = array<i64: 1, 384>}, {pipeline_mode = #tpu.pipeline_mode<synchronous>, transform_indices = @transform_7, window_bounds = array<i64: 384, 128>}, {pipeline_mode = #tpu.pipeline_mode<synchronous>, transform_indices = @transform_8, window_bounds = array<i64: 1, 128>}, {transform_indices = @transform_9, window_bounds = array<i64: 8, 128>}]} {
    %c0 = arith.constant 0 : index
    %c0_0 = arith.constant 0 : index
    %0 = vector.load %arg1[%c0, %c0_0] : memref<8x16xf32, #tpu.memory_space<vmem>>, vector<8x16xf32>
    %c0_1 = arith.constant 0 : index
    %c0_2 = arith.constant 0 : index
    %1 = vector.load %arg3[%c0_1, %c0_2] : memref<16x128xf32, #tpu.memory_space<vmem>>, vector<16x128xf32>
    %cst = arith.constant dense<0.000000e+00> : vector<8x128xf32>
    %2 = tpu.matmul %0, %1, %cst {dimension_numbers = #tpu.dot_dimension_numbers<[1], [0], [0], [1], [0, 0, 1, 1], [], []>} : vector<8x16xf32>, vector<16x128xf32>, vector<8x128xf32> -> vector<8x128xf32>
    %c0_3 = arith.constant 0 : index
    %c0_4 = arith.constant 0 : index
    %3 = vector.load %arg2[%c0_3, %c0_4] : memref<8x4xf32, #tpu.memory_space<vmem>>, vector<8x4xf32>
    %c0_5 = arith.constant 0 : index
    %c0_6 = arith.constant 0 : index
    %4 = vector.load %arg4[%c0_5, %c0_6] : memref<4x128xf32, #tpu.memory_space<vmem>>, vector<4x128xf32>
    %cst_7 = arith.constant dense<0.000000e+00> : vector<8x128xf32>
    %5 = tpu.matmul %3, %4, %cst_7 {dimension_numbers = #tpu.dot_dimension_numbers<[1], [0], [0], [1], [0, 0, 1, 1], [], []>} : vector<8x4xf32>, vector<4x128xf32>, vector<8x128xf32> -> vector<8x128xf32>
    %6 = arith.addf %2, %5 : vector<8x128xf32>
    %c0_8 = arith.constant 0 : index
    %c0_9 = arith.constant 0 : index
    %7 = vector.load %arg5[%c0_8, %c0_9] : memref<1x128xf32, #tpu.memory_space<vmem>>, vector<1x128xf32>
    %8 = vector.broadcast %7 : vector<1x128xf32> to vector<8x128xf32>
    %9 = arith.addf %6, %8 : vector<8x128xf32>
    %cst_10 = arith.constant 0.000000e+00 : f32
    %10 = vector.broadcast %cst_10 : f32 to vector<8x128xf32>
    %11 = arith.maximumf %9, %10 : vector<8x128xf32>
    %c0_11 = arith.constant 0 : index
    %c0_12 = arith.constant 0 : index
    %12 = vector.load %arg6[%c0_11, %c0_12] : memref<128x384xf32, #tpu.memory_space<vmem>>, vector<128x384xf32>
    %cst_13 = arith.constant dense<0.000000e+00> : vector<8x384xf32>
    %13 = tpu.matmul %11, %12, %cst_13 {dimension_numbers = #tpu.dot_dimension_numbers<[1], [0], [0], [1], [0, 0, 1, 1], [], []>} : vector<8x128xf32>, vector<128x384xf32>, vector<8x384xf32> -> vector<8x384xf32>
    %c0_14 = arith.constant 0 : index
    %c0_15 = arith.constant 0 : index
    %14 = vector.load %arg7[%c0_14, %c0_15] : memref<1x384xf32, #tpu.memory_space<vmem>>, vector<1x384xf32>
    %15 = vector.broadcast %14 : vector<1x384xf32> to vector<8x384xf32>
    %16 = arith.addf %13, %15 : vector<8x384xf32>
    %cst_16 = arith.constant 0.000000e+00 : f32
    %17 = vector.broadcast %cst_16 : f32 to vector<8x384xf32>
    %18 = arith.maximumf %16, %17 : vector<8x384xf32>
    %c0_17 = arith.constant 0 : index
    %c0_18 = arith.constant 0 : index
    %19 = vector.load %arg8[%c0_17, %c0_18] : memref<384x128xf32, #tpu.memory_space<vmem>>, vector<384x128xf32>
    %cst_19 = arith.constant dense<0.000000e+00> : vector<8x128xf32>
    %20 = tpu.matmul %18, %19, %cst_19 {dimension_numbers = #tpu.dot_dimension_numbers<[1], [0], [0], [1], [0, 0, 1, 1], [], []>} : vector<8x384xf32>, vector<384x128xf32>, vector<8x128xf32> -> vector<8x128xf32>
    %c0_20 = arith.constant 0 : index
    %c0_21 = arith.constant 0 : index
    %21 = vector.load %arg9[%c0_20, %c0_21] : memref<1x128xf32, #tpu.memory_space<vmem>>, vector<1x128xf32>
    %22 = vector.broadcast %21 : vector<1x128xf32> to vector<8x128xf32>
    %23 = arith.addf %20, %22 : vector<8x128xf32>
    %c0_22 = arith.constant 0 : index
    %c0_23 = arith.constant 0 : index
    %24 = vector.load %arg10[%c0_22, %c0_23] : memref<8x128xf32, #tpu.memory_space<vmem>>, vector<8x128xf32>
    tpu.vector_store %arg10[%c0_22, %c0_23], %23 {strides = array<i32>} : memref<8x128xf32, #tpu.memory_space<vmem>>, vector<8x128xf32>,
    return
  }
  func.func @transform_0(%arg0: i32) -> (i32, i32) {
    %c0_i32 = arith.constant 0 : i32
    %c0_i32_0 = arith.constant 0 : i32
    return %arg0, %c0_i32 : i32, i32
  }
  func.func @transform_1(%arg0: i32) -> (i32, i32) {
    %c0_i32 = arith.constant 0 : i32
    %c0_i32_0 = arith.constant 0 : i32
    return %arg0, %c0_i32 : i32, i32
  }
  func.func @transform_2(%arg0: i32) -> (i32, i32) {
    %c0_i32 = arith.constant 0 : i32
    %c0_i32_0 = arith.constant 0 : i32
    %c0_i32_1 = arith.constant 0 : i32
    return %c0_i32, %c0_i32_0 : i32, i32
  }
  func.func @transform_3(%arg0: i32) -> (i32, i32) {
    %c0_i32 = arith.constant 0 : i32
    %c0_i32_0 = arith.constant 0 : i32
    %c0_i32_1 = arith.constant 0 : i32
    return %c0_i32, %c0_i32_0 : i32, i32
  }
  func.func @transform_4(%arg0: i32) -> (i32, i32) {
    %c0_i32 = arith.constant 0 : i32
    %c0_i32_0 = arith.constant 0 : i32
    %c0_i32_1 = arith.constant 0 : i32
    return %c0_i32, %c0_i32_0 : i32, i32
  }
  func.func @transform_5(%arg0: i32) -> (i32, i32) {
    %c0_i32 = arith.constant 0 : i32
    %c0_i32_0 = arith.constant 0 : i32
    %c0_i32_1 = arith.constant 0 : i32
    return %c0_i32, %c0_i32_0 : i32, i32
  }
  func.func @transform_6(%arg0: i32) -> (i32, i32) {
    %c0_i32 = arith.constant 0 : i32
    %c0_i32_0 = arith.constant 0 : i32
    %c0_i32_1 = arith.constant 0 : i32
    return %c0_i32, %c0_i32_0 : i32, i32
  }
  func.func @transform_7(%arg0: i32) -> (i32, i32) {
    %c0_i32 = arith.constant 0 : i32
    %c0_i32_0 = arith.constant 0 : i32
    %c0_i32_1 = arith.constant 0 : i32
    return %c0_i32, %c0_i32_0 : i32, i32
  }
  func.func @transform_8(%arg0: i32) -> (i32, i32) {
    %c0_i32 = arith.constant 0 : i32
    %c0_i32_0 = arith.constant 0 : i32
    %c0_i32_1 = arith.constant 0 : i32
    return %c0_i32, %c0_i32_0 : i32, i32
  }
  func.func @transform_9(%arg0: i32) -> (i32, i32) {
    %c0_i32 = arith.constant 0 : i32
    %c0_i32_0 = arith.constant 0 : i32
    return %arg0, %c0_i32 : i32, i32
  }
}

</mosaic_0001>

<bundles_post_ra>
// kernel: tpu_custom_call.1
= control target key start
LH: loop header
LB: loop body
LE: loop exit
PB: predicated region body
PF: predicated region fallthrough
CT: control target
= control target key end

     0   :  { %14 = vsyncpa [#allocation3], 0  ;;  %s1052_s0 = inlined_call_operand.vmem [shape: f32[8,16], index: 0, kind: input, shape index: {}]   ;;  %s1053_s1 = inlined_call_operand.vmem [shape: f32[8,4], index: 1, kind: input, shape index: {}]   ;;  %s1054_s2 = inlined_call_operand.hbm [shape: f32[16,128], index: 2, kind: input, shape index: {}]   ;;  %s1055_s3 = inlined_call_operand.vmem [shape: f32[4,128], index: 3, kind: input, shape index: {}]   ;;  %s1056_s4 = inlined_call_operand.vmem [shape: f32[1,128], index: 4, kind: input, shape index: {}]   ;;  %s1057_s5 = inlined_call_operand.hbm [shape: f32[128,384], index: 5, kind: input, shape index: {}]   ;;  %s1058_s6 = inlined_call_operand.vmem [shape: f32[1,384], index: 6, kind: input, shape index: {}]   ;;  %s1059_s7 = inlined_call_operand.hbm [shape: f32[384,128], index: 7, kind: input, shape index: {}]   ;;  %s1060_s8 = inlined_call_operand.vmem [shape: f32[1,128], index: 8, kind: input, shape index: {}]   ;;  %s1061_s9 = inlined_call_operand.hbm [shape: f32[8,128], index: 9, kind: output, shape index: {}]  }
   0x1   :  { %15 = vsyncpa [#allocation6], 0 }
   0x2   :  { %16 = vsyncpa [#allocation4], 0  ;;  %s918_s30 = smov [#allocation5]  }
   0x3   :  { %s42_s10 = sshll.u32 %s918_s30, 4  ;;  %s43_s10 = int_to_ptr.vmem [resolvable:$true] %s42_s10 }
   0x4   :  { %s840_s11 = scalar_lea.vmem %s43_s10, 6144  ;;  %p845_p1 = scmp.lt.s32.totalorder %s43_s10, %s43_s10 }
   0x5   :  { %p841_p0 = scmp.ne.s32.totalorder %s43_s10, %s840_s11  ;;  %p846_p2 = scmp.lt.s32.totalorder %s840_s11, %s840_s11 }
   0x7   :  { %p847_p3 = por %p846_p2, %p845_p1 }
   0x9   :  { %p848_p4 = pnand %p847_p3, %p841_p0 }
   0xb   :  { %851 = shalt.err (!%p848_p4)
}
   0xc   :  { %s919_s12 = smov 384   ;;  %s920_s13 = smov 24  }
   0xd   :  { %48 = dma.hbm_to_vmem [thread:$0]  %s1057_s5, 6144, %s43_s10, [#allocation6], %s919_s12, %s919_s12, %s920_s13  }
   0xe   :  { %s921_s16 = smov [#allocation2]  }
   0xf   :  { %s26_s17 = sshll.u32 %s921_s16, 4  ;;  %s27_s17 = int_to_ptr.vmem [resolvable:$true] %s26_s17 }
  0x10   :  { %s860_s18 = scalar_lea.vmem %s27_s17, 256  ;;  %p865_p6 = scmp.lt.s32.totalorder %s27_s17, %s27_s17 }
  0x11   :  { %p861_p5 = scmp.ne.s32.totalorder %s27_s17, %s860_s18  ;;  %p866_p7 = scmp.lt.s32.totalorder %s860_s18, %s860_s18 }
  0x13   :  { %p867_p8 = por %p866_p7, %p865_p6 }
  0x15   :  { %p868_p9 = pnand %p867_p8, %p861_p5 }
  0x17   :  { %871 = shalt.err (!%p868_p9)
}
  0x18   :  { %s922_s19 = smov 128   ;;  %s923_s20 = smov 8  }
  0x19   :  { %32 = dma.hbm_to_vmem [thread:$0]  %s1054_s2, 256, %s27_s17, [#allocation3], %s922_s19, %s922_s19, %s923_s20  }
  0x1a   :  { %s924_s23 = smov [#allocation7]  }
  0x1b   :  { %s56_s24 = sshll.u32 %s924_s23, 4  ;;  %s57_s24 = int_to_ptr.vmem [resolvable:$true] %s56_s24 }
  0x1c   :  { %s880_s5 = scalar_lea.vmem %s57_s24, 6144  ;;  %p885_p11 = scmp.lt.s32.totalorder %s57_s24, %s57_s24 }
  0x1d   :  { %p881_p10 = scmp.ne.s32.totalorder %s57_s24, %s880_s5  ;;  %p886_p12 = scmp.lt.s32.totalorder %s880_s5, %s880_s5 }
  0x1f   :  { %p887_p13 = por %p886_p12, %p885_p11 }
  0x21   :  { %p888_p0 = pnand %p887_p13, %p881_p10 }
  0x23   :  { %891 = shalt.err (!%p888_p0)
}
  0x24   :  { %62 = dma.hbm_to_vmem [thread:$0]  %s1059_s7, 6144, %s57_s24, [#allocation6], %s922_s19, %s922_s19, %s923_s20  }
  0x25   :  { %912 = dma.done.wait [#allocation3], 256  }
  0x26   :  { %913 = vsyncadd [#allocation3], 4294967040 }
  0x27   :  { %914 = dma.done.wait [#allocation6], 12288  }
  0x28   :  { %915 = vsyncadd [#allocation6], 4294955008  ;;  %v925_v0 = vmov 0.0   ;;  %vm926_vm0 = vmmov 0   ;;  %vm83_vm1 = vcmask 1043456   ;;  %vm79_vm2 = vcmask 31744  }
  0x29   :  { %740 = vmatprep.subr.mxu0 %v925_v0  ;;  %745 = vmatprep.subr.mxu1 %v925_v0  ;;  %v78_v1 = vld [vmem:[%s1055_s3] sm:$0xf]  ;;  %v76_v2 = vld [vmem:[#allocation2 + $0x8] sm:$0xff]  ;;  %vm157_vm3 = vcmask 130048   ;;  %v285_v7 = vld [vmem:[#allocation5 + $0x168] sm:$0xff]  ;;  %s927_s11 = smov [#allocation8]  }
  0x2a   :  { %742 = vmatprep.mubr.msk.f32.mxu0 %vm926_vm0, %v925_v0  ;;  %749 = vmatprep.mubr.msk.f32.mxu1 %vm926_vm0, %v925_v0  ;;  %v77_v3 = vld [vmem:[%s1053_s1] sm:$0xff]  ;;  %v287_v8 = vld [vmem:[#allocation5 + $0x178] sm:$0xff]  ;;  %v284_v11 = vld [vmem:[#allocation5 + $0x160] sm:$0xff]  ;;  %s651_s12 = sshll.u32 %s927_s11, 4  ;;  %s652_s12 = int_to_ptr.vmem [resolvable:$true] %s651_s12 }
  0x2b   :  { %741 = vmatpush3.msk.msra.mxu0 %vm83_vm1, %v78_v1  ;;  %746 = vmatpush3.msra.mxu1 %v76_v2  ;;  %v75_v4 = vld [vmem:[#allocation2] sm:$0xff]  ;;  %v283_v9 = vld [vmem:[#allocation5 + $0x158] sm:$0xff]  ;;  %v280_v12 = vld [vmem:[#allocation5 + $0x140] sm:$0xff]  ;;  %s892_s13 = scalar_lea.vmem %s652_s12, 128  ;;  %p897_p2 = scmp.lt.s32.totalorder %s652_s12, %s652_s12 }
  0x2c   :  { %v74_v5 = vld [vmem:[%s1052_s0] sm:$0xff]  ;;  %743 = vmatmul.mubr.msk.f32.vlgmr.msra.gmra.mxu0 %vm79_vm2, %v77_v3  ;;  %747 = vmatprep.subr.mxu1 %v925_v0  ;;  %v279_v13 = vld [vmem:[#allocation5 + $0x138] sm:$0xff]  ;;  %v281_v14 = vld [vmem:[#allocation5 + $0x148] sm:$0xff]  ;;  %p893_p1 = scmp.ne.s32.totalorder %s652_s12, %s892_s13  ;;  %p898_p3 = scmp.lt.s32.totalorder %s892_s13, %s892_s13 }
  0x2d   :  { %v286_v6 = vld [vmem:[#allocation5 + $0x170] sm:$0xff]  ;;  %748 = vmatpush3.msra.mxu1 %v75_v4  ;;  %v277_v15 = vld [vmem:[#allocation5 + $0x128] sm:$0xff]  ;;  %v276_v16 = vld [vmem:[#allocation5 + $0x120] sm:$0xff]  ;;  %369 = vmatprep.mubr.f32.mxu0 %v925_v0 }
  0x2e   :  { %305 = vmatprep.subr.mxu0 %v286_v6  ;;  %750 = vmatmul.mubr.msk.f32.vlgmr.msra.gmra.mxu1 %vm157_vm3, %v74_v5  ;;  %v282_v10 = vld [vmem:[#allocation5 + $0x150] sm:$0xff]  ;;  %v273_v19 = vld [vmem:[#allocation5 + $0x108] sm:$0xff]  ;;  %v275_v20 = vld [vmem:[#allocation5 + $0x118] sm:$0xff]  ;;  %p899_p4 = por %p898_p3, %p897_p2 }
  0x2f   :  { %752 = vmatprep.subr.mxu1 %v925_v0  ;;  %306 = vmatpush1.msra.mxu0 %v285_v7  ;;  %v278_v17 = vld [vmem:[#allocation5 + $0x130] sm:$0xff]  ;;  %v271_v21 = vld [vmem:[#allocation5 + $0xf8] sm:$0xff]  ;;  %v272_v23 = vld [vmem:[#allocation5 + $0x100] sm:$0xff] }
  0x30   :  { %753 = vmatpush3.msra.mxu1 %v287_v8  ;;  %307 = vmatprep.subr.mxu0 %v283_v9  ;;  %v274_v18 = vld [vmem:[#allocation5 + $0x110] sm:$0xff]  ;;  %v268_v24 = vld [vmem:[#allocation5 + $0xe0] sm:$0xff]  ;;  %v267_v25 = vld [vmem:[#allocation5 + $0xd8] sm:$0xff]  ;;  %p900_p5 = pnand %p899_p4, %p893_p1 }
  0x31   :  { %754 = vmatprep.subr.mxu1 %v925_v0  ;;  %308 = vmatpush1.msra.mxu0 %v282_v10  ;;  %v270_v22 = vld [vmem:[#allocation5 + $0xf0] sm:$0xff]  ;;  %v269_v26 = vld [vmem:[#allocation5 + $0xe8] sm:$0xff]  ;;  %v264_v28 = vld [vmem:[#allocation5 + $0xc0] sm:$0xff] }
  0x32   :  { %755 = vmatpush3.msra.mxu1 %v284_v11  ;;  %309 = vmatprep.subr.mxu0 %v280_v12  ;;  %v265_v27 = vld [vmem:[#allocation5 + $0xc8] sm:$0xff]  ;;  %v266_v29 = vld [vmem:[#allocation5 + $0xd0] sm:$0xff]  ;;  %v263_v32 = vld [vmem:[#allocation5 + $0xb8] sm:$0xff] }
  0x33   :  { %756 = vmatprep.subr.mxu1 %v925_v0  ;;  %310 = vmatpush1.msra.mxu0 %v279_v13  ;;  %v262_v30 = vld [vmem:[#allocation5 + $0xb0] sm:$0xff]  ;;  %v261_v31 = vld [vmem:[#allocation5 + $0xa8] sm:$0xff]  ;;  %v259_v33 = vld [vmem:[#allocation5 + $0x98] sm:$0xff] }
  0x34   :  { %757 = vmatpush3.msra.mxu1 %v281_v14  ;;  %311 = vmatprep.subr.mxu0 %v277_v15  ;;  %v258_v34 = vld [vmem:[#allocation5 + $0x90] sm:$0xff]  ;;  %v260_v35 = vld [vmem:[#allocation5 + $0xa0] sm:$0xff]  ;;  %v255_v37 = vld [vmem:[#allocation5 + $0x78] sm:$0xff] }
  0x35   :  { %758 = vmatprep.subr.mxu1 %v925_v0  ;;  %312 = vmatpush1.msra.mxu0 %v276_v16  ;;  %v256_v36 = vld [vmem:[#allocation5 + $0x80] sm:$0xff]  ;;  %v257_v38 = vld [vmem:[#allocation5 + $0x88] sm:$0xff]  ;;  %v254_v41 = vld [vmem:[#allocation5 + $0x70] sm:$0xff] }
  0x36   :  { %759 = vmatpush3.msra.mxu1 %v278_v17  ;;  %313 = vmatprep.subr.mxu0 %v274_v18  ;;  %v253_v39 = vld [vmem:[#allocation5 + $0x68] sm:$0xff]  ;;  %v252_v40 = vld [vmem:[#allocation5 + $0x60] sm:$0xff]  ;;  %v250_v42 = vld [vmem:[#allocation5 + $0x50] sm:$0xff] }
  0x37   :  { %760 = vmatprep.subr.mxu1 %v925_v0  ;;  %314 = vmatpush1.msra.mxu0 %v273_v19  ;;  %v249_v43 = vld [vmem:[#allocation5 + $0x48] sm:$0xff]  ;;  %v251_v44 = vld [vmem:[#allocation5 + $0x58] sm:$0xff]  ;;  %v246_v46 = vld [vmem:[#allocation5 + $0x30] sm:$0xff] }
  0x38   :  { %761 = vmatpush3.msra.mxu1 %v275_v20  ;;  %315 = vmatprep.subr.mxu0 %v271_v21  ;;  %v247_v45 = vld [vmem:[#allocation5 + $0x38] sm:$0xff]  ;;  %v248_v47 = vld [vmem:[#allocation5 + $0x40] sm:$0xff]  ;;  %v245_v50 = vld [vmem:[#allocation5 + $0x28] sm:$0xff] }
  0x39   :  { %762 = vmatprep.subr.mxu1 %v925_v0  ;;  %316 = vmatpush1.msra.mxu0 %v270_v22  ;;  %v244_v48 = vld [vmem:[#allocation5 + $0x20] sm:$0xff]  ;;  %v243_v49 = vld [vmem:[#allocation5 + $0x18] sm:$0xff]  ;;  %v241_v51 = vld [vmem:[#allocation5 + $0x8] sm:$0xff] }
  0x3a   :  { %763 = vmatpush3.msra.mxu1 %v272_v23  ;;  %317 = vmatprep.subr.mxu0 %v268_v24  ;;  %v240_v52 = vld [vmem:[#allocation5] sm:$0xff]  ;;  %v242_v53 = vld [vmem:[#allocation5 + $0x10] sm:$0xff]  ;;  %v480_v54 = vld [vmem:[#allocation7 + $0xf8] sm:$0xff] }
  0x3b   :  { %764 = vmatprep.subr.mxu1 %v925_v0  ;;  %318 = vmatpush1.msra.mxu0 %v267_v25  ;;  %v664_v58 = vld [vmem:[%s1056_s4] ss:$0 sm:$0xff]  ;;  %v496_v63 = vld [vmem:[#allocation7 + $0x178] sm:$0xff]  ;;  %v478_v5 = vld [vmem:[#allocation7 + $0xe8] sm:$0xff] }
  0x3c   :  { %765 = vmatpush3.msra.mxu1 %v269_v26  ;;  %319 = vmatprep.subr.mxu0 %v265_v27  ;;  %v464_v1 = vld [vmem:[#allocation7 + $0x78] sm:$0xff]  ;;  %v479_v2 = vld [vmem:[#allocation7 + $0xf0] sm:$0xff]  ;;  %v494_v6 = vld [vmem:[#allocation7 + $0x168] sm:$0xff] }
  0x3d   :  { %766 = vmatprep.subr.mxu1 %v925_v0  ;;  %320 = vmatpush1.msra.mxu0 %v264_v28  ;;  %v495_v3 = vld [vmem:[#allocation7 + $0x170] sm:$0xff]  ;;  %v462_v7 = vld [vmem:[#allocation7 + $0x68] sm:$0xff]  ;;  %v477_v8 = vld [vmem:[#allocation7 + $0xe0] sm:$0xff] }
  0x3e   :  { %767 = vmatpush3.msra.mxu1 %v266_v29  ;;  %321 = vmatprep.subr.mxu0 %v262_v30  ;;  %v463_v4 = vld [vmem:[#allocation7 + $0x70] sm:$0xff]  ;;  %v493_v9 = vld [vmem:[#allocation7 + $0x160] sm:$0xff]  ;;  %v476_v11 = vld [vmem:[#allocation7 + $0xd8] sm:$0xff] }
  0x3f   :  { %768 = vmatprep.subr.mxu1 %v925_v0  ;;  %322 = vmatpush1.msra.mxu0 %v261_v31  ;;  %v461_v10 = vld [vmem:[#allocation7 + $0x60] sm:$0xff]  ;;  %v492_v12 = vld [vmem:[#allocation7 + $0x158] sm:$0xff]  ;;  %v475_v14 = vld [vmem:[#allocation7 + $0xd0] sm:$0xff] }
  0x40   :  { %769 = vmatpush3.msra.mxu1 %v263_v32  ;;  %323 = vmatprep.subr.mxu0 %v259_v33  ;;  %v460_v13 = vld [vmem:[#allocation7 + $0x58] sm:$0xff]  ;;  %v491_v15 = vld [vmem:[#allocation7 + $0x150] sm:$0xff]  ;;  %v474_v17 = vld [vmem:[#allocation7 + $0xc8] sm:$0xff] }
  0x41   :  { %770 = vmatprep.subr.mxu1 %v925_v0  ;;  %324 = vmatpush1.msra.mxu0 %v258_v34  ;;  %v459_v16 = vld [vmem:[#allocation7 + $0x50] sm:$0xff]  ;;  %v490_v18 = vld [vmem:[#allocation7 + $0x148] sm:$0xff]  ;;  %v473_v20 = vld [vmem:[#allocation7 + $0xc0] sm:$0xff] }
  0x42   :  { %771 = vmatpush3.msra.mxu1 %v260_v35  ;;  %325 = vmatprep.subr.mxu0 %v256_v36  ;;  %v458_v19 = vld [vmem:[#allocation7 + $0x48] sm:$0xff]  ;;  %v489_v21 = vld [vmem:[#allocation7 + $0x140] sm:$0xff]  ;;  %v472_v23 = vld [vmem:[#allocation7 + $0xb8] sm:$0xff] }
  0x43   :  { %772 = vmatprep.subr.mxu1 %v925_v0  ;;  %326 = vmatpush1.msra.mxu0 %v255_v37  ;;  %v457_v22 = vld [vmem:[#allocation7 + $0x40] sm:$0xff]  ;;  %v488_v24 = vld [vmem:[#allocation7 + $0x138] sm:$0xff]  ;;  %v471_v26 = vld [vmem:[#allocation7 + $0xb0] sm:$0xff] }
  0x44   :  { %773 = vmatpush3.msra.mxu1 %v257_v38  ;;  %327 = vmatprep.subr.mxu0 %v253_v39  ;;  %v456_v25 = vld [vmem:[#allocation7 + $0x38] sm:$0xff]  ;;  %v487_v27 = vld [vmem:[#allocation7 + $0x130] sm:$0xff]  ;;  %v470_v29 = vld [vmem:[#allocation7 + $0xa8] sm:$0xff] }
  0x45   :  { %774 = vmatprep.subr.mxu1 %v925_v0  ;;  %784 = vmatprep.mubr.msk.f32.mxu1 %vm926_vm0, %v925_v0  ;;  %v455_v28 = vld [vmem:[#allocation7 + $0x30] sm:$0xff]  ;;  %v486_v30 = vld [vmem:[#allocation7 + $0x128] sm:$0xff]  ;;  %v469_v32 = vld [vmem:[#allocation7 + $0xa0] sm:$0xff] }
  0x46   :  { %328 = vmatpush1.msra.mxu0 %v252_v40  ;;  %775 = vmatpush3.msra.mxu1 %v254_v41  ;;  %v454_v31 = vld [vmem:[#allocation7 + $0x28] sm:$0xff]  ;;  %v485_v33 = vld [vmem:[#allocation7 + $0x120] sm:$0xff]  ;;  %v484_v35 = vld [vmem:[#allocation7 + $0x118] sm:$0xff] }
  0x47   :  { %329 = vmatprep.subr.mxu0 %v250_v42  ;;  %776 = vmatprep.subr.mxu1 %v925_v0  ;;  %v453_v34 = vld [vmem:[#allocation7 + $0x20] sm:$0xff]  ;;  %v468_v36 = vld [vmem:[#allocation7 + $0x98] sm:$0xff]  ;;  %v483_v37 = vld [vmem:[#allocation7 + $0x110] sm:$0xff] }
  0x48   :  { %330 = vmatpush1.msra.mxu0 %v249_v43  ;;  %777 = vmatpush3.msra.mxu1 %v251_v44  ;;  %v452_v38 = vld [vmem:[#allocation7 + $0x18] sm:$0xff]  ;;  %v467_v39 = vld [vmem:[#allocation7 + $0x90] sm:$0xff]  ;;  %v482_v40 = vld [vmem:[#allocation7 + $0x108] sm:$0xff] }
  0x49   :  { %331 = vmatprep.subr.mxu0 %v247_v45  ;;  %778 = vmatprep.subr.mxu1 %v925_v0  ;;  %v451_v41 = vld [vmem:[#allocation7 + $0x10] sm:$0xff]  ;;  %v466_v42 = vld [vmem:[#allocation7 + $0x88] sm:$0xff]  ;;  %v481_v43 = vld [vmem:[#allocation7 + $0x100] sm:$0xff] }
  0x4a   :  { %332 = vmatpush1.msra.mxu0 %v246_v46  ;;  %779 = vmatpush3.msra.mxu1 %v248_v47  ;;  %v450_v44 = vld [vmem:[#allocation7 + $0x8] sm:$0xff]  ;;  %v465_v45 = vld [vmem:[#allocation7 + $0x80] sm:$0xff]  ;;  %v290_v47 = vlaneseq }
  0x4b   :  { %333 = vmatprep.subr.mxu0 %v244_v48  ;;  %780 = vmatprep.subr.mxu1 %v925_v0  ;;  %v449_v46 = vld [vmem:[#allocation7] sm:$0xff] }
  0x4c   :  { %334 = vmatpush1.msra.mxu0 %v243_v49  ;;  %781 = vmatpush3.msra.mxu1 %v245_v50  ;;  %v291_v48 = vshrl.u32 %v290_v47, 7  ;;  %v288_v50 = vld [vmem:[%s1058_s6] sm:$0x7] }
  0x4d   :  { %335 = vmatprep.subr.mxu0 %v241_v51  ;;  %782 = vmatprep.subr.mxu1 %v925_v0 }
  0x4e   :  { %336 = vmatpush1.msra.mxu0 %v240_v52  ;;  %783 = vmatpush3.msra.mxu1 %v242_v53  ;;  %v300_v49 = vsub.s32 2, %v291_v48  ;;  %v292_v51 = vsub.s32 0, %v291_v48  ;;  %v296_v52 = vsub.s32 1, %v291_v48 }
  0x4f   :  { %787 = vmatprep.subr.mxu1 %v925_v0  ;;  %688 = vmatprep.subr.mxu0 %v480_v54 }
  0x50   :  { %v293_v53 = vrot.slane %v288_v50, %v292_v51  ;;  %v297_v54 = vrot.slane %v288_v50, %v296_v52 }
  0xec   :  { %v153_v55 = vpop.f32.mrf.mxu0 }
  0xee   :  { %v744_v56 = vpop.f32.mrf.mxu0  ;;  %v227_v57 = vpop.f32.mrf.mxu1 }
  0xef   :  { %v228_v59 = vadd.f32 %v227_v57, %v153_v55 }
  0xf0   :  { %v751_v60 = vpop.f32.mrf.mxu1 }
  0xf1   :  { %v238_v61 = vadd.f32 %v664_v58, %v228_v59 }
  0xf3   :  { %v239_v62 = vmax.f32 %v238_v61, 0.0 }
  0xf5   :  { %370 = vmatmul.mubr.f32.vlgmr.msra.gmra.mxu0 %v239_v62  ;;  %785 = vmatmul.mubr.f32.vlgmr.msra.gmra.mxu1 %v239_v62 }
  0xf6   :  { %788 = vmatpush3.msra.mxu1 %v496_v63  ;;  %689 = vmatpush3.msra.mxu0 %v464_v1 }
  0xf7   :  { %789 = vmatprep.subr.mxu1 %v925_v0  ;;  %690 = vmatprep.subr.mxu0 %v479_v2 }
  0xf8   :  { %790 = vmatpush3.msra.mxu1 %v495_v3  ;;  %691 = vmatpush3.msra.mxu0 %v463_v4 }
  0xf9   :  { %791 = vmatprep.subr.mxu1 %v925_v0  ;;  %692 = vmatprep.subr.mxu0 %v478_v5  ;;  %v665_v5 = vld [vmem:[%s1060_s8] ss:$0 sm:$0xff] }
  0xfa   :  { %792 = vmatpush3.msra.mxu1 %v494_v6  ;;  %693 = vmatpush3.msra.mxu0 %v462_v7 }
  0xfb   :  { %793 = vmatprep.subr.mxu1 %v925_v0  ;;  %694 = vmatprep.subr.mxu0 %v477_v8 }
  0xfc   :  { %794 = vmatpush3.msra.mxu1 %v493_v9  ;;  %695 = vmatpush3.msra.mxu0 %v461_v10 }
  0xfd   :  { %795 = vmatprep.subr.mxu1 %v925_v0  ;;  %696 = vmatprep.subr.mxu0 %v476_v11 }
  0xfe   :  { %796 = vmatpush3.msra.mxu1 %v492_v12  ;;  %697 = vmatpush3.msra.mxu0 %v460_v13 }
  0xff   :  { %797 = vmatprep.subr.mxu1 %v925_v0  ;;  %698 = vmatprep.subr.mxu0 %v475_v14 }
 0x100   :  { %798 = vmatpush3.msra.mxu1 %v491_v15  ;;  %699 = vmatpush3.msra.mxu0 %v459_v16 }
 0x101   :  { %799 = vmatprep.subr.mxu1 %v925_v0  ;;  %700 = vmatprep.subr.mxu0 %v474_v17 }
 0x102   :  { %800 = vmatpush3.msra.mxu1 %v490_v18  ;;  %701 = vmatpush3.msra.mxu0 %v458_v19 }
 0x103   :  { %801 = vmatprep.subr.mxu1 %v925_v0  ;;  %702 = vmatprep.subr.mxu0 %v473_v20 }
 0x104   :  { %802 = vmatpush3.msra.mxu1 %v489_v21  ;;  %703 = vmatpush3.msra.mxu0 %v457_v22 }
 0x105   :  { %803 = vmatprep.subr.mxu1 %v925_v0  ;;  %704 = vmatprep.subr.mxu0 %v472_v23 }
 0x106   :  { %804 = vmatpush3.msra.mxu1 %v488_v24  ;;  %705 = vmatpush3.msra.mxu0 %v456_v25 }
 0x107   :  { %805 = vmatprep.subr.mxu1 %v925_v0  ;;  %706 = vmatprep.subr.mxu0 %v471_v26 }
 0x108   :  { %806 = vmatpush3.msra.mxu1 %v487_v27  ;;  %707 = vmatpush3.msra.mxu0 %v455_v28 }
 0x109   :  { %807 = vmatprep.subr.mxu1 %v925_v0  ;;  %708 = vmatprep.subr.mxu0 %v470_v29 }
 0x10a   :  { %808 = vmatpush3.msra.mxu1 %v486_v30  ;;  %709 = vmatpush3.msra.mxu0 %v454_v31 }
 0x10b   :  { %809 = vmatprep.subr.mxu1 %v925_v0  ;;  %710 = vmatprep.subr.mxu0 %v469_v32 }
 0x10c   :  { %810 = vmatpush3.msra.mxu1 %v485_v33  ;;  %711 = vmatpush3.msra.mxu0 %v453_v34 }
 0x10d   :  { %811 = vmatprep.subr.mxu1 %v925_v0  ;;  %819 = vmatprep.mubr.msk.f32.mxu1 %vm926_vm0, %v925_v0 }
 0x10e   :  { %812 = vmatpush3.msra.mxu1 %v484_v35  ;;  %712 = vmatprep.subr.mxu0 %v468_v36 }
 0x10f   :  { %813 = vmatprep.subr.mxu1 %v925_v0  ;;  %713 = vmatpush3.msra.mxu0 %v452_v38 }
 0x110   :  { %814 = vmatpush3.msra.mxu1 %v483_v37  ;;  %714 = vmatprep.subr.mxu0 %v467_v39 }
 0x111   :  { %815 = vmatprep.subr.mxu1 %v925_v0  ;;  %715 = vmatpush3.msra.mxu0 %v451_v41 }
 0x112   :  { %816 = vmatpush3.msra.mxu1 %v482_v40  ;;  %716 = vmatprep.subr.mxu0 %v466_v42 }
 0x113   :  { %817 = vmatprep.subr.mxu1 %v925_v0  ;;  %717 = vmatpush3.msra.mxu0 %v450_v44  ;;  %v301_v0 = vrot.slane %v288_v50, %v300_v49 }
 0x114   :  { %818 = vmatpush3.msra.mxu1 %v481_v43  ;;  %718 = vmatprep.subr.mxu0 %v465_v45 }
 0x115   :  { %719 = vmatpush3.msra.mxu0 %v449_v46 }
 0x1b5   :  { %v371_v55 = vpop.f32.mrf.mxu0  ;;  %v442_v56 = vpop.f32.mrf.mxu1 }
 0x1b6   :  { %v443_v57 = vadd.f32 %v442_v56, %v301_v0  ;;  %v372_v58 = vadd.f32 %v371_v55, %v293_v53 }
 0x1b7   :  { %v373_v59 = vpop.f32.mrf.mxu0  ;;  %v786_v60 = vpop.f32.mrf.mxu1 }
 0x1b8   :  { %v448_v61 = vmax.f32 %v443_v57, 0.0  ;;  %v374_v62 = vadd.f32 %v373_v59, %v297_v54  ;;  %v446_v1 = vmax.f32 %v372_v58, 0.0 }
 0x1ba   :  { %v447_v63 = vmax.f32 %v374_v62, 0.0  ;;  %820 = vmatmul.mubr.f32.vlgmr.msra.gmra.mxu1 %v448_v61 }
 0x1bc   :  { %568 = vmatprep.mubr.f32.mxu0 %v447_v63 }
 0x1bd   :  { %569 = vmatmul.mubr.f32.vlgmr.msra.gmra.mxu0 %v446_v1 }
 0x27a   :  { %v640_v2 = vpop.f32.mrf.mxu1 }
 0x27c   :  { %v821_v3 = vpop.f32.mrf.mxu1 }
 0x27d   :  { %v720_v4 = vpop.f32.mrf.mxu0 }
 0x27f   :  { %v721_v6 = vpop.f32.mrf.mxu0 }
 0x280   :  { %v722_v7 = vadd.f32 %v721_v6, %v720_v4 }
 0x282   :  { %v571_v8 = vadd.f32 %v722_v7, %v665_v5 }
 0x284   :  { %v641_v9 = vadd.f32 %v640_v2, %v571_v8 }
 0x286   :  { %644 = vst [vmem:[#allocation8] sm:$0xff] %v641_v9 }
 0x287   :  { %903 = shalt.err (!%p900_p5)
}
 0x288   :  { %654 = dma.vmem_to_hbm [thread:$0]  %s652_s12, 128, %s1061_s9, [#allocation4]  }
 0x289   :  { %916 = dma.done.wait [#allocation4], 128  }
 0x28a   :  { %917 = vsyncadd [#allocation4], 4294967168 }
 0x28b   :  { %658 = vsyncpa [#allocation3], 1 }
 0x28c   :  { %659 = vsyncpa [#allocation6], 1 }
 0x28d   :  { %660 = vsyncpa [#allocation4], 1 }

</bundles_post_ra>
